<compile_context>
chip_gen: v7x
topology: tpu7x:2x2x1
jax: 0.10.0
libtpu: 0.0.40
codegen_flags: <defaults>
</compile_context>

<pallas_src>
import jax
import jax.numpy as jnp
from jax.experimental import pallas as pl
from jax.experimental.pallas import tpu as pltpu


def _round_up(x: int, m: int) -> int:
    return ((x + m - 1) // m) * m


def dense_embedding_kernel(x_ref, w1_ref, b1_ref, w2_ref, b2_ref, o_ref):
    # x arrives as f32; cast to bf16 in-kernel (VPU op, free under DMA slack).
    x = x_ref[...].astype(jnp.bfloat16)
    # Layer 1: hidden = ReLU(x @ W1 + b1)   (bf16 matmul, f32 accumulate/epilogue)
    h = jnp.dot(x, w1_ref[...], preferred_element_type=jnp.float32)
    h = jnp.maximum(h + b1_ref[...], 0.0)
    # Layer 2: out = ReLU(h @ W2 + b2)   -- written unpadded (TB, E)
    y = jnp.dot(h.astype(w2_ref.dtype), w2_ref[...],
                preferred_element_type=jnp.float32)
    y = jnp.maximum(y + b2_ref[...], 0.0)
    o_ref[...] = y.astype(o_ref.dtype)


def _vmem_estimate_bytes(tb: int, f: int, hp: int, e: int) -> int:
    # double-buffered streamed tiles: x tile (f32) + out tile (f32),
    # plus the in-kernel bf16 copy of the x tile
    streamed = 2 * (tb * f * 4 + tb * e * 4) + tb * f * 2
    # resident weights/biases (default double-buffered by the pipeline)
    weights = 2 * (f * hp * 2 + hp * 4 + hp * e * 2 + e * 4)
    # in-flight compute intermediates (h, y in f32)
    compute = tb * hp * 4 + tb * e * 4
    return streamed + weights + compute


def _vmem_capacity_bytes() -> int:
    try:
        return int(pltpu.get_tpu_info().vmem_capacity_bytes)
    except Exception:
        return 64 * 1024 * 1024  # v7x per-TC capacity; safe lower bound


def dense_embedding(x, w1, b1, w2, b2, *, batch_tile: int = 2048,
                    out_dtype=jnp.float32):
    """Fused 2-layer MLP with ReLUs.

    x : (B, in_features) float32
    w1: (in_features, hidden)   b1: (hidden,) or (1, hidden)
    w2: (hidden, embedding)     b2: (embedding,) or (1, embedding)
    returns (B, embedding) in out_dtype (default float32; pass bfloat16 to
    halve the writeback bytes if downstream consumers accept it)
    """
    B, F = x.shape
    H = w1.shape[1]
    E = w2.shape[1]

    # Hidden dim padded to lane width (weights are tiny & VMEM-resident, so the
    # extra bytes are a one-time DMA).  E is NOT padded: the output is written
    # unpadded to keep HBM writeback at the useful byte count.
    Hp = _round_up(H, 128)

    # Batch padded only to a multiple of 16 (bf16-native sublane tile);
    # a no-op when B is already a multiple of 16.
    Bp = _round_up(B, 16)

    # VMEM budget derived from hardware (v7x: 64 MiB/TC, v5e/v6e: 128 MiB).
    vmem_budget = _vmem_capacity_bytes() // 2

    # Batch tile: multiple of 16 (validates caller-provided batch_tile), capped
    # by Bp, shrunk to fit the VMEM budget.
    TB = max(16, (min(batch_tile, Bp) // 16) * 16)
    while TB > 16 and _vmem_estimate_bytes(TB, F, Hp, E) > vmem_budget:
        TB = max(16, ((TB // 2) // 16) * 16)
    # Keep at least 2 grid steps when the batch allows it so the "parallel"
    # batch axis gives work to both TensorCores on v7x.
    if Bp >= 32:
        TB = min(TB, _round_up(pl.cdiv(Bp, 2), 16))

    grid = (pl.cdiv(Bp, TB),)  # ragged tail handled by a partial last block

    # One-time host-side prep of the (tiny) weights; x stays f32 and is only
    # row-padded to a multiple of 16.
    xp = jnp.pad(x, ((0, Bp - B), (0, 0))).astype(jnp.float32)
    w1p = jnp.pad(w1, ((0, 0), (0, Hp - H))).astype(jnp.bfloat16)
    b1p = jnp.pad(b1.reshape(1, -1), ((0, 0), (0, Hp - H))).astype(jnp.float32)
    w2p = jnp.pad(w2, ((0, Hp - H), (0, 0))).astype(jnp.bfloat16)
    b2p = b2.reshape(1, -1).astype(jnp.float32)

    vmem_limit = int(min(max(2 * _vmem_estimate_bytes(TB, F, Hp, E),
                             16 * 1024 * 1024),
                         vmem_budget))

    out_bytes = Bp * E * jnp.dtype(out_dtype).itemsize
    cost = pl.CostEstimate(
        flops=2 * Bp * (F * Hp + Hp * E),
        transcendentals=0,
        bytes_accessed=(xp.size * 4 + w1p.size * 2 + b1p.size * 4
                        + w2p.size * 2 + b2p.size * 4 + out_bytes),
    )

    # NOTE: pipeline_mode=pl.Buffered(1) on the four resident operands would
    # halve their VMEM footprint; omitted here since their total footprint is
    # < 100 KiB at these feature dims.  The "pack 128/E rows per output row"
    # variant is only worth adding if masked E=8 stores show up as a bottleneck
    # (most likely on v5e with its single vst slot).
    out_padded = pl.pallas_call(
        dense_embedding_kernel,
        out_shape=jax.ShapeDtypeStruct((Bp, E), out_dtype),
        grid_spec=pltpu.PrefetchScalarGridSpec(
            num_scalar_prefetch=0,
            grid=grid,
            in_specs=[
                pl.BlockSpec((TB, F), lambda i: (i, 0)),   # x: streamed over batch
                pl.BlockSpec((F, Hp), lambda i: (0, 0)),   # W1: resident
                pl.BlockSpec((1, Hp), lambda i: (0, 0)),   # b1: resident
                pl.BlockSpec((Hp, E), lambda i: (0, 0)),   # W2: resident
                pl.BlockSpec((1, E), lambda i: (0, 0)),    # b2: resident
            ],
            out_specs=pl.BlockSpec((TB, E), lambda i: (i, 0)),
        ),
        compiler_params=pltpu.CompilerParams(
            dimension_semantics=("parallel",),
            vmem_limit_bytes=vmem_limit,
        ),
        cost_estimate=cost,
    )(xp, w1p, b1p, w2p, b2p)

    # Strip batch padding only (no column padding was ever written).
    return out_padded[:B] if Bp != B else out_padded


def reference_bf16(x, w1, b1, w2, b2):
    """Reference with the same bf16-matmul / f32-epilogue numerics as the kernel."""
    h = jnp.dot(x.astype(jnp.bfloat16), w1.astype(jnp.bfloat16),
                preferred_element_type=jnp.float32)
    h = jnp.maximum(h + b1.reshape(1, -1).astype(jnp.float32), 0.0)
    y = jnp.dot(h.astype(jnp.bfloat16), w2.astype(jnp.bfloat16),
                preferred_element_type=jnp.float32)
    return jnp.maximum(y + b2.reshape(1, -1).astype(jnp.float32), 0.0)


def reference_f32(x, w1, b1, w2, b2):
    """Pure-f32 reference matching the PyTorch module numerics."""
    h = jnp.maximum(x @ w1 + b1.reshape(1, -1), 0.0)
    return jnp.maximum(h @ w2 + b2.reshape(1, -1), 0.0)


if __name__ == "__main__":
    # Small shapes consistent with the module's forward pass.
    batch = 2
    in_features = 16
    hidden_features = 32
    embedding_dims = 8

    key = jax.random.PRNGKey(0)
    kx, k1, k2, k3, k4 = jax.random.split(key, 5)

    x = jax.random.normal(kx, (batch, in_features), dtype=jnp.float32)

    # Parameters stored as (in, out), i.e. pre-transposed vs. torch.nn.Linear's (out, in).
    w1 = jax.random.normal(k1, (in_features, hidden_features), dtype=jnp.float32) * 0.1
    b1 = jax.random.normal(k2, (1, hidden_features), dtype=jnp.float32) * 0.1
    w2 = jax.random.normal(k3, (hidden_features, embedding_dims), dtype=jnp.float32) * 0.1
    b2 = jax.random.normal(k4, (1, embedding_dims), dtype=jnp.float32) * 0.1

    out = dense_embedding(x, w1, b1, w2, b2)
    out = jax.block_until_ready(out)

    ref_b = reference_bf16(x, w1, b1, w2, b2)
    ref_f = reference_f32(x, w1, b1, w2, b2)

    assert out.shape == (batch, embedding_dims)
    assert jnp.allclose(out, ref_b, atol=1e-4, rtol=1e-4), "mismatch vs bf16-matched reference"
    # Looser check against the true f32 (PyTorch-equivalent) numerics.
    assert jnp.allclose(out, ref_f, atol=2e-2, rtol=2e-2), "mismatch vs f32 reference"

    print("KERNEL_OK")
</pallas_src>

<mosaic_0001>
module attributes {stable_mosaic.version = 11 : i64} {
  func.func @dense_embedding_kernel(%arg0: i32, %arg1: memref<16x16xf32, #tpu.memory_space<vmem>>, %arg2: memref<16x128xbf16, #tpu.memory_space<vmem>>, %arg3: memref<1x128xf32, #tpu.memory_space<vmem>>, %arg4: memref<128x8xbf16, #tpu.memory_space<vmem>>, %arg5: memref<1x8xf32, #tpu.memory_space<vmem>>, %arg6: memref<16x8xf32, #tpu.memory_space<vmem>>) attributes {dimension_semantics = [#tpu.dimension_semantics<parallel>], iteration_bounds = array<i64: 1>, scalar_prefetch = 0 : i64, scratch_operands = 0 : i64, tpu.core_type = #tpu.core_type<tc>, window_params = [{transform_indices = @transform_0, window_bounds = array<i64: 16, 16>}, {pipeline_mode = #tpu.pipeline_mode<synchronous>, transform_indices = @transform_1, window_bounds = array<i64: 16, 128>}, {pipeline_mode = #tpu.pipeline_mode<synchronous>, transform_indices = @transform_2, window_bounds = array<i64: 1, 128>}, {pipeline_mode = #tpu.pipeline_mode<synchronous>, transform_indices = @transform_3, window_bounds = array<i64: 128, 8>}, {pipeline_mode = #tpu.pipeline_mode<synchronous>, transform_indices = @transform_4, window_bounds = array<i64: 1, 8>}, {transform_indices = @transform_5, window_bounds = array<i64: 16, 8>}]} {
    %c0 = arith.constant 0 : index
    %c0_0 = arith.constant 0 : index
    %0 = vector.load %arg1[%c0, %c0_0] : memref<16x16xf32, #tpu.memory_space<vmem>>, vector<16x16xf32>
    %1 = arith.truncf %0 : vector<16x16xf32> to vector<16x16xbf16>
    %c0_1 = arith.constant 0 : index
    %c0_2 = arith.constant 0 : index
    %2 = vector.load %arg2[%c0_1, %c0_2] : memref<16x128xbf16, #tpu.memory_space<vmem>>, vector<16x128xbf16>
    %cst = arith.constant dense<0.000000e+00> : vector<16x128xf32>
    %3 = tpu.matmul %1, %2, %cst {dimension_numbers = #tpu.dot_dimension_numbers<[1], [0], [0], [1], [0, 0, 1, 1], [], []>} : vector<16x16xbf16>, vector<16x128xbf16>, vector<16x128xf32> -> vector<16x128xf32>
    %c0_3 = arith.constant 0 : index
    %c0_4 = arith.constant 0 : index
    %4 = vector.load %arg3[%c0_3, %c0_4] : memref<1x128xf32, #tpu.memory_space<vmem>>, vector<1x128xf32>
    %5 = vector.broadcast %4 : vector<1x128xf32> to vector<16x128xf32>
    %6 = arith.addf %3, %5 : vector<16x128xf32>
    %cst_5 = arith.constant 0.000000e+00 : f32
    %7 = vector.broadcast %cst_5 : f32 to vector<16x128xf32>
    %8 = arith.maximumf %6, %7 : vector<16x128xf32>
    %9 = arith.truncf %8 : vector<16x128xf32> to vector<16x128xbf16>
    %c0_6 = arith.constant 0 : index
    %c0_7 = arith.constant 0 : index
    %10 = vector.load %arg4[%c0_6, %c0_7] : memref<128x8xbf16, #tpu.memory_space<vmem>>, vector<128x8xbf16>
    %cst_8 = arith.constant dense<0.000000e+00> : vector<16x8xf32>
    %11 = tpu.matmul %9, %10, %cst_8 {dimension_numbers = #tpu.dot_dimension_numbers<[1], [0], [0], [1], [0, 0, 1, 1], [], []>} : vector<16x128xbf16>, vector<128x8xbf16>, vector<16x8xf32> -> vector<16x8xf32>
    %c0_9 = arith.constant 0 : index
    %c0_10 = arith.constant 0 : index
    %12 = vector.load %arg5[%c0_9, %c0_10] : memref<1x8xf32, #tpu.memory_space<vmem>>, vector<1x8xf32>
    %13 = vector.broadcast %12 : vector<1x8xf32> to vector<16x8xf32>
    %14 = arith.addf %11, %13 : vector<16x8xf32>
    %cst_11 = arith.constant 0.000000e+00 : f32
    %15 = vector.broadcast %cst_11 : f32 to vector<16x8xf32>
    %16 = arith.maximumf %14, %15 : vector<16x8xf32>
    %c0_12 = arith.constant 0 : index
    %c0_13 = arith.constant 0 : index
    %17 = vector.load %arg6[%c0_12, %c0_13] : memref<16x8xf32, #tpu.memory_space<vmem>>, vector<16x8xf32>
    tpu.vector_store %arg6[%c0_12, %c0_13], %16 {strides = array<i32>} : memref<16x8xf32, #tpu.memory_space<vmem>>, vector<16x8xf32>,
    return
  }
  func.func @transform_0(%arg0: i32) -> (i32, i32) {
    %c0_i32 = arith.constant 0 : i32
    %c0_i32_0 = arith.constant 0 : i32
    return %arg0, %c0_i32 : i32, i32
  }
  func.func @transform_1(%arg0: i32) -> (i32, i32) {
    %c0_i32 = arith.constant 0 : i32
    %c0_i32_0 = arith.constant 0 : i32
    %c0_i32_1 = arith.constant 0 : i32
    return %c0_i32, %c0_i32_0 : i32, i32
  }
  func.func @transform_2(%arg0: i32) -> (i32, i32) {
    %c0_i32 = arith.constant 0 : i32
    %c0_i32_0 = arith.constant 0 : i32
    %c0_i32_1 = arith.constant 0 : i32
    return %c0_i32, %c0_i32_0 : i32, i32
  }
  func.func @transform_3(%arg0: i32) -> (i32, i32) {
    %c0_i32 = arith.constant 0 : i32
    %c0_i32_0 = arith.constant 0 : i32
    %c0_i32_1 = arith.constant 0 : i32
    return %c0_i32, %c0_i32_0 : i32, i32
  }
  func.func @transform_4(%arg0: i32) -> (i32, i32) {
    %c0_i32 = arith.constant 0 : i32
    %c0_i32_0 = arith.constant 0 : i32
    %c0_i32_1 = arith.constant 0 : i32
    return %c0_i32, %c0_i32_0 : i32, i32
  }
  func.func @transform_5(%arg0: i32) -> (i32, i32) {
    %c0_i32 = arith.constant 0 : i32
    %c0_i32_0 = arith.constant 0 : i32
    return %arg0, %c0_i32 : i32, i32
  }
}

</mosaic_0001>

<bundles_post_ra>
// kernel: tpu_custom_call.1
= control target key start
LH: loop header
LB: loop body
LE: loop exit
PB: predicated region body
PF: predicated region fallthrough
CT: control target
= control target key end

     0   :  { %v268_v0 = vmov 0.0   ;;  %vm269_vm0 = vmmov 0   ;;  %vm39_vm1 = vcmask 130048   ;;  %vm201_vm2 = vcmask 64512   ;;  %s345_s1 = inlined_call_operand.vmem [shape: bf16[16,128], index: 1, kind: input, shape index: {}]   ;;  %s346_s0 = inlined_call_operand.vmem [shape: f32[16,16], index: 0, kind: input, shape index: {}]   ;;  %s347_s3 = inlined_call_operand.vmem [shape: bf16[128,8], index: 3, kind: input, shape index: {}]   ;;  %s348_s2 = inlined_call_operand.vmem [shape: f32[1,128], index: 2, kind: input, shape index: {}]   ;;  %s349_s4 = inlined_call_operand.vmem [shape: f32[1,8], index: 4, kind: input, shape index: {}]   ;;  %s350_s5 = inlined_call_operand.vmem [shape: f32[16,8], index: 5, kind: output, shape index: {}]  }
   0x1   :  { %231 = vmatprep.subr.bf16.mxu0 %v268_v0  ;;  %v259_v1 = vld [vmem:[%s345_s1] sm:$0xff]   ;;  %233 = vmatprep.mubr.msk.bf16.mxu0 %vm269_vm0, %v268_v0  ;;  %v22_v3 = vld [vmem:[%s346_s0 + $0x8] sm:$0xff]  ;;  %v262_v7 = vld [vmem:[%s347_s3 + $0x10] sm:$0xff]  }
   0x2   :  { %v21_v2 = vld [vmem:[%s346_s0] sm:$0xff]  ;;  %237 = vmatprep.subr.bf16.mxu1 %v268_v0  ;;  %253 = vmatprep.mubr.msk.bf16.mxu1 %vm269_vm0, %v268_v0  ;;  %v261_v6 = vld [vmem:[%s347_s3 + $0x8] sm:$0xff]   ;;  %v263_v8 = vld [vmem:[%s347_s3 + $0x18] sm:$0xff]  }
   0x3   :  { %232 = vmatpush3.bf16.msra.mxu0 %v259_v1  ;;  %v23_v4 = vpack.c.bf16 %v22_v3, %v21_v2  ;;  %v260_v5 = vld [vmem:[%s347_s3] sm:$0xff]   ;;  %v265_v10 = vld [vmem:[%s347_s3 + $0x28] sm:$0xff]   ;;  %v266_v11 = vld [vmem:[%s347_s3 + $0x30] sm:$0xff]  }
   0x4   :  { %238 = vmatpush3.bf16.msra.mxu1 %v260_v5  ;;  %v264_v9 = vld [vmem:[%s347_s3 + $0x20] sm:$0xff]   ;;  %v267_v12 = vld [vmem:[%s347_s3 + $0x38] sm:$0xff]  }
   0x5   :  { %239 = vmatprep.subr.bf16.mxu1 %v268_v0  ;;  %v208_v13 = vld [vmem:[%s348_s2] ss:$0 sm:$0xff] }
   0x6   :  { %234 = vmatmul.mubr.msk.bf16.vlgmr.msra.gmra.mrb[0].mxu0 %vm39_vm1, %v23_v4  ;;  %v211_v23 = vld [vmem:[%s349_s4] ss:$0 sm:$0xff] }
   0x8   :  { %240 = vmatpush3.bf16.msra.mxu1 %v261_v6 }
   0x9   :  { %241 = vmatprep.subr.bf16.mxu1 %v268_v0 }
   0xc   :  { %242 = vmatpush3.bf16.msra.mxu1 %v262_v7 }
   0xd   :  { %243 = vmatprep.subr.bf16.mxu1 %v268_v0 }
  0x10   :  { %244 = vmatpush3.bf16.msra.mxu1 %v263_v8 }
  0x11   :  { %245 = vmatprep.subr.bf16.mxu1 %v268_v0 }
  0x14   :  { %246 = vmatpush3.bf16.msra.mxu1 %v264_v9 }
  0x15   :  { %247 = vmatprep.subr.bf16.mxu1 %v268_v0 }
  0x18   :  { %248 = vmatpush3.bf16.msra.mxu1 %v265_v10 }
  0x19   :  { %249 = vmatprep.subr.bf16.mxu1 %v268_v0 }
  0x1c   :  { %250 = vmatpush3.bf16.msra.mxu1 %v266_v11 }
  0x1d   :  { %251 = vmatprep.subr.bf16.mxu1 %v268_v0 }
  0x20   :  { %252 = vmatpush3.bf16.msra.mxu1 %v267_v12 }
  0xd9   :  { %v77_v14 = vpop.f32.mrb[0].mxu0 }
  0xda   :  { %v78_v15 = vadd.f32 %v208_v13, %v77_v14  ;;  %v235_v16 = vpop.f32.mrb[1].mxu0 }
  0xdb   :  { %v80_v17 = vpop.f32.mrb[2].mxu0 }
  0xdc   :  { %v81_v18 = vadd.f32 %v208_v13, %v80_v17  ;;  %v236_v19 = vpop.f32.mrb[3].mxu0  ;;  %v84_v20 = vmax.f32 %v78_v15, 0.0 }
  0xde   :  { %v85_v21 = vmax.f32 %v81_v18, 0.0 }
  0xe0   :  { %v86_v22 = vpack.c.bf16 %v85_v21, %v84_v20 }
  0xe2   :  { %254 = vmatmul.mubr.bf16.vlgmr.msra.gmra.mrb[0].mxu1 %v86_v22 }
 0x1b5   :  { %v192_v24 = vpop.f32.mrb[0].mxu1 }
 0x1b6   :  { %v193_v25 = vadd.f32 %v211_v23, %v192_v24  ;;  %v255_v26 = vpop.f32.mrb[1].mxu1 }
 0x1b7   :  { %v195_v27 = vpop.f32.mrb[2].mxu1 }
 0x1b8   :  { %v199_v28 = vmax.f32 %v193_v25, 0.0  ;;  %v196_v29 = vadd.f32 %v211_v23, %v195_v27  ;;  %v256_v30 = vpop.f32.mrb[3].mxu1 }
 0x1ba   :  { %202 = vst.msk [vmem:[%s350_s5] sm:$0xff] %vm201_vm2, %v199_v28  ;;  %v200_v31 = vmax.f32 %v196_v29, 0.0 }
 0x1bc   :  { %203 = vst.msk [vmem:[%s350_s5 + $0x8] sm:$0xff] %vm201_vm2, %v200_v31 }

</bundles_post_ra>
